<compile_context>
chip_gen: v5e
topology: v5e:2x2
jax: 0.10.0
libtpu: 0.0.40
codegen_flags: <defaults>
</compile_context>

<pallas_src>
from types import SimpleNamespace

import jax
import jax.numpy as jnp
from jax.experimental import pallas as pl
from jax.experimental.pallas import tpu as pltpu

# Above the 16 MiB v5e scoped default, well under v7x's 64 MiB physical VMEM.
_VMEM_LIMIT = 32 * 1024 * 1024


def _round_up(x, m):
    return ((x + m - 1) // m) * m


def _l2_normalize(x, eps=1e-12):
    n = jnp.sqrt(jnp.sum(x * x, axis=-1, keepdims=True))
    return x / jnp.maximum(n, eps)


def _pack_tag_bitmask(tags):
    """(..., T) {0,1} tags -> int32 bitmask.  Requires T <= 31."""
    t = tags.shape[-1]
    # TODO(synk): for num_classes > 32 this needs multi-word bitmasks.
    bits = (tags > 0).astype(jnp.int32) << jnp.arange(t, dtype=jnp.int32)
    return jnp.sum(bits, axis=-1).astype(jnp.int32)


# --------------------------------------------------------------------------
# Pallas kernels
# --------------------------------------------------------------------------
def _similarity_kernel(a_ref, b_ref, o_ref):
    # o = a @ b^T  (cosine similarity for L2-normalized rows); bf16 MXU, f32 acc.
    o_ref[...] = jax.lax.dot_general(
        a_ref[...], b_ref[...],
        dimension_numbers=(((1,), (1,)), ((), ())),
        preferred_element_type=jnp.float32)


def similarity(a, b, tile_m=512, tile_n=512):
    """Cosine similarity (M, N) between row sets a (M,D), b (N,D); tiled over both."""
    m, d = a.shape
    n = b.shape[0]
    tile_m = min(tile_m, _round_up(m, 8))
    tile_n = min(tile_n, _round_up(n, 128))
    m_pad = _round_up(m, tile_m)
    n_pad = _round_up(n, tile_n)
    a = jnp.pad(a.astype(jnp.bfloat16), ((0, m_pad - m), (0, 0)))
    b = jnp.pad(b.astype(jnp.bfloat16), ((0, n_pad - n), (0, 0)))
    # Output kept f32: it only feeds top_k, but bf16 could flip near-ties in the
    # neighbour ranking, so we keep full precision for the write (cheap at these M).
    out = pl.pallas_call(
        _similarity_kernel,
        out_shape=jax.ShapeDtypeStruct((m_pad, n_pad), jnp.float32),
        grid=(m_pad // tile_m, n_pad // tile_n),
        in_specs=[pl.BlockSpec((tile_m, d), lambda i, j: (i, 0)),
                  pl.BlockSpec((tile_n, d), lambda i, j: (j, 0))],
        out_specs=pl.BlockSpec((tile_m, tile_n), lambda i, j: (i, j)),
        compiler_params=pltpu.CompilerParams(
            dimension_semantics=("parallel", "parallel"),
            vmem_limit_bytes=_VMEM_LIMIT),
    )(a, b)
    return out[:m, :n]


def _prototype_kernel(emb_ref, idx_ref, out_ref, acc_ref, iota_ref):
    # segsort_common.calculate_prototypes_from_labels:
    #   segment-sum expressed as a one-hot matmul on the MXU (contraction = TN),
    #   accumulated into a f32 VMEM scratch across pixel tiles, L2-norm epilogue.
    pc = pl.program_id(1)        # prototype chunk (parallel axis)
    k = pl.program_id(2)         # pixel tile (reduction axis)
    tile_p = acc_ref.shape[0]

    @pl.when(k == 0)
    def _init():
        acc_ref[...] = jnp.zeros_like(acc_ref)
        # Row ids for this prototype chunk, filled once and reused every pixel tile.
        iota_ref[...] = pc * tile_p + jax.lax.broadcasted_iota(
            jnp.int32, iota_ref.shape, 0)

    onehot_t = (iota_ref[...] == idx_ref[...]).astype(jnp.bfloat16)   # (tile_p, TN)
    acc_ref[...] += jnp.dot(onehot_t, emb_ref[...],
                            preferred_element_type=jnp.float32)       # (tile_p, D)

    @pl.when(k == pl.num_programs(2) - 1)
    def _finalize():
        s = acc_ref[...]
        norm = jnp.sqrt(jnp.sum(s * s, axis=-1, keepdims=True))
        # TODO(synk): empty clusters yield an all-zero prototype (the PyTorch ref
        # drops them via torch.unique relabelling); benign for the vMF grouping.
        out_ref[...] = (s / jnp.maximum(norm, 1e-12)).astype(out_ref.dtype)


def calculate_prototypes(embeddings, cluster_indices, num_prototypes,
                         tile_n=512, tile_p=None):
    """Batched prototypes: embeddings (B,N,D), indices (B,N) -> (B,P,D) bf16, L2-normalized."""
    b, n, d = embeddings.shape
    tile_n = min(tile_n, _round_up(n, 128))
    n_pad = _round_up(n, tile_n)
    n_tiles = n_pad // tile_n

    p_pad8 = _round_up(num_prototypes, 8)
    if tile_p is None:
        # When B == 1 (predictions path) split the prototype axis into >=2 chunks so
        # the leading `parallel` grid axes have extent > 1 (v7x has 2 TensorCores).
        tile_p = p_pad8 // 2 if (b == 1 and p_pad8 >= 16) else p_pad8
    tile_p = max(8, _round_up(min(tile_p, p_pad8), 8))
    p_pad = _round_up(num_prototypes, tile_p)
    p_chunks = p_pad // tile_p

    emb = jnp.pad(embeddings.astype(jnp.bfloat16), ((0, 0), (0, n_pad - n), (0, 0)))
    idx = jnp.pad(cluster_indices.astype(jnp.int32), ((0, 0), (0, n_pad - n)),
                  constant_values=p_pad)                 # padded rows map to no prototype
    idx = idx.reshape(b, 1, n_pad)

    out = pl.pallas_call(
        _prototype_kernel,
        out_shape=jax.ShapeDtypeStruct((b, p_pad, d), jnp.bfloat16),
        grid=(b, p_chunks, n_tiles),
        in_specs=[pl.BlockSpec((None, tile_n, d), lambda bb, pc, k: (bb, k, 0)),
                  pl.BlockSpec((None, 1, tile_n), lambda bb, pc, k: (bb, 0, k))],
        out_specs=pl.BlockSpec((None, tile_p, d), lambda bb, pc, k: (bb, pc, 0)),
        scratch_shapes=[pltpu.VMEM((tile_p, d), jnp.float32),
                        pltpu.VMEM((tile_p, tile_n), jnp.int32)],
        compiler_params=pltpu.CompilerParams(
            dimension_semantics=("parallel", "parallel", "arbitrary"),
            vmem_limit_bytes=_VMEM_LIMIT),
    )(emb, idx)
    return out[:, :num_prototypes]


def _make_label_loss_kernel(concentration, valid_threshold):
    kappa = float(concentration)
    thr = int(valid_threshold)

    def kernel(emb_ref, proto_ref, plab_ref, klab_ref, out_ref):
        # emb (TN,D) bf16; proto (P,D) bf16; plab (1,TN) i32; klab (P,1) i32; out (1,TN) f32
        # per-pixel vMF log-likelihood ratio ("segsort+" grouping):
        #   loss_i = LSE_{j valid} k<e_i,mu_j> - LSE_{j: lab_j==lab_i, valid} k<e_i,mu_j>
        # kappa is applied to the f32 logits post-matmul (no extra bf16 rounding).
        logits = kappa * jax.lax.dot_general(                          # (P, TN) f32
            proto_ref[...], emb_ref[...],
            dimension_numbers=(((1,), (1,)), ((), ())),
            preferred_element_type=jnp.float32)
        valid = klab_ref[...] < thr                                    # (P, 1)
        pos = jnp.logical_and(klab_ref[...] == plab_ref[...], valid)   # (P, TN)
        neg = jnp.float32(-1e30)
        den_logits = jnp.where(valid, logits, neg)
        # Single exp, shared max: |logits| <= kappa so exp(pos - m) cannot underflow
        # meaningfully; the shared max cancels in the LSE difference.
        m = jnp.max(den_logits, axis=0, keepdims=True)                 # (1, TN)
        e = jnp.exp(den_logits - m)                                    # (P, TN) single exp
        sum_den = jnp.sum(e, axis=0, keepdims=True)
        sum_pos = jnp.sum(jnp.where(pos, e, 0.0), axis=0, keepdims=True)
        has_pos = sum_pos > 0.0
        out_ref[...] = jnp.where(
            has_pos,
            jnp.log(sum_den) - jnp.log(jnp.maximum(sum_pos, 1e-30)),
            0.0)

    return kernel


def segsort_label_losses(embeddings, prototypes, pixel_labels, proto_labels,
                         concentration, valid_threshold, tile_n=512):
    """Per-pixel SegSortLoss ('segsort+'): masks rebuilt in-kernel from label vectors.

    embeddings (B,N,D), prototypes (B,P,D), pixel_labels (B,N), proto_labels (B,P) -> (B,N) f32.
    """
    b, n, d = embeddings.shape
    p = prototypes.shape[1]
    tile_n = min(tile_n, _round_up(n, 128))
    n_pad = _round_up(n, tile_n)
    n_tiles = n_pad // tile_n
    emb = jnp.pad(embeddings.astype(jnp.bfloat16), ((0, 0), (0, n_pad - n), (0, 0)))
    protos = prototypes.astype(jnp.bfloat16)
    plab = jnp.pad(pixel_labels.astype(jnp.int32), ((0, 0), (0, n_pad - n)),
                   constant_values=-1).reshape(b, 1, n_pad)
    klab = proto_labels.astype(jnp.int32).reshape(b, p, 1)
    out = pl.pallas_call(
        _make_label_loss_kernel(concentration, valid_threshold),
        out_shape=jax.ShapeDtypeStruct((1, b * n_pad), jnp.float32),
        grid=(b, n_tiles),
        in_specs=[pl.BlockSpec((None, tile_n, d), lambda bb, k: (bb, k, 0)),
                  pl.BlockSpec((None, p, d), lambda bb, k: (bb, 0, 0)),
                  pl.BlockSpec((None, 1, tile_n), lambda bb, k: (bb, 0, k)),
                  pl.BlockSpec((None, p, 1), lambda bb, k: (bb, 0, 0))],
        out_specs=pl.BlockSpec((1, tile_n), lambda bb, k: (0, bb * n_tiles + k)),
        compiler_params=pltpu.CompilerParams(
            dimension_semantics=("parallel", "parallel"),
            vmem_limit_bytes=_VMEM_LIMIT),
    )(emb, protos, plab, klab)
    return out.reshape(b, n_pad)[:, :n]


def _make_tag_loss_kernel(concentration):
    kappa = float(concentration)

    def kernel(emb_ref, proto_ref, ptag_ref, ktag_ref, out_ref):
        # emb (TN,D) bf16; proto (P,D) bf16; ptag (1,TN) i32 bitmask; ktag (P,1) i32 bitmask
        # SetSegSortLoss: positives = prototypes sharing any image-level tag; denom = all
        # prototypes (matches the reference, which passes the full prototype set here).
        logits = kappa * jax.lax.dot_general(
            proto_ref[...], emb_ref[...],
            dimension_numbers=(((1,), (1,)), ((), ())),
            preferred_element_type=jnp.float32)                        # (P, TN)
        pos = (ktag_ref[...] & ptag_ref[...]) != 0                     # (P, TN) VPU bit-and
        m = jnp.max(logits, axis=0, keepdims=True)
        e = jnp.exp(logits - m)                                        # single exp
        sum_den = jnp.sum(e, axis=0, keepdims=True)
        sum_pos = jnp.sum(jnp.where(pos, e, 0.0), axis=0, keepdims=True)
        has_pos = sum_pos > 0.0
        out_ref[...] = jnp.where(
            has_pos,
            jnp.log(sum_den) - jnp.log(jnp.maximum(sum_pos, 1e-30)),
            0.0)

    return kernel


def segsort_tag_losses(embeddings, prototypes, pixel_tags, proto_tags,
                       concentration, tile_n=512):
    """Per-pixel SetSegSortLoss; tag overlap via int32 bitmasks (no (N,T) mask transfer)."""
    n, d = embeddings.shape
    p = proto_tags.shape[0]
    tile_n = min(tile_n, _round_up(n, 128))
    n_pad = _round_up(n, tile_n)
    emb = jnp.pad(embeddings.astype(jnp.bfloat16), ((0, n_pad - n), (0, 0)))
    protos = prototypes.astype(jnp.bfloat16)
    ptag = jnp.pad(_pack_tag_bitmask(pixel_tags), (0, n_pad - n)).reshape(1, n_pad)
    ktag = _pack_tag_bitmask(proto_tags).reshape(p, 1)
    out = pl.pallas_call(
        _make_tag_loss_kernel(concentration),
        out_shape=jax.ShapeDtypeStruct((1, n_pad), jnp.float32),
        grid=(n_pad // tile_n,),
        in_specs=[pl.BlockSpec((tile_n, d), lambda i: (i, 0)),
                  pl.BlockSpec((p, d), lambda i: (0, 0)),
                  pl.BlockSpec((1, tile_n), lambda i: (0, i)),
                  pl.BlockSpec((p, 1), lambda i: (0, 0))],
        out_specs=pl.BlockSpec((1, tile_n), lambda i: (0, i)),
        compiler_params=pltpu.CompilerParams(
            dimension_semantics=("parallel",),
            vmem_limit_bytes=_VMEM_LIMIT),
    )(emb, protos, ptag, ktag)
    return out[0, :n]


# --------------------------------------------------------------------------
# Glue (plain JAX)
# --------------------------------------------------------------------------
def top_k_labels(query_protos, memory_protos, memory_labels, k):
    sim = similarity(query_protos, memory_protos)   # Pallas MXU matmul (tiled over both axes)
    _, topk_idx = jax.lax.top_k(sim, k)
    return memory_labels[topk_idx]


def majority_label_from_topk(topk_lab, num_label_values):
    counts = jnp.sum(jax.nn.one_hot(topk_lab, num_label_values, dtype=jnp.int32),
                     axis=1)
    return jnp.argmax(counts, axis=-1).astype(jnp.int32)


class SegsortPallas:
    """JAX/Pallas port of spml Segsort forward (predictions + losses)."""

    def __init__(self, cfg):
        self.cfg = cfg

    # ----- predictions ----------------------------------------------------
    def predictions(self, datas, targets):
        cfg = self.cfg
        emb = datas['cluster_embedding']
        c_idx = datas['cluster_index'].astype(jnp.int32)
        mem_protos = targets['semantic_memory_prototype']
        mem_labels = targets['semantic_memory_prototype_label'].astype(jnp.int32)
        # TODO(synk): torch.unique(return_inverse) has a dynamic output shape;
        # cluster indices are assumed already dense in [0, num_clusters).
        protos = calculate_prototypes(emb[None], c_idx[None], cfg.num_clusters)[0]
        # The PyTorch split loop ranks each chunk against the full memory bank,
        # which is equivalent to ranking everything at once.
        topk_lab = top_k_labels(protos, mem_protos, mem_labels, 20)       # (C, 20)
        majority = majority_label_from_topk(topk_lab, cfg.num_classes)    # (C,)
        semantic_pred = majority[c_idx]                                   # gather
        semantic_topk = topk_lab[c_idx]                                   # index_select
        return semantic_pred, semantic_topk

    # ----- losses -----------------------------------------------------------
    def losses(self, datas, targets):
        cfg = self.cfg
        nc = cfg.num_classes
        cluster_indices = datas['cluster_index'].astype(jnp.int32)
        embeddings = datas['cluster_embedding']
        semantic_labels = datas['cluster_semantic_label'].astype(jnp.int32)
        batch_indices = datas['cluster_batch_index'].astype(jnp.int32)
        prototypes = targets['prototype']
        proto_sem_labels = targets['prototype_semantic_label'].astype(jnp.int32)
        semantic_tags = targets['semantic_tag'][:, 1:nc][batch_indices]     # (N, nc-1)
        proto_sem_tags = targets['prototype_semantic_tag'][:, 1:nc]         # (P, nc-1)

        # --- sem_ann_loss (SegSortLoss, group_mode='segsort+') ---------------
        valid_pix = semantic_labels < nc
        valid_proto = proto_sem_labels < nc
        # TODO(synk): the masked_fill + torch.unique cluster relabelling only
        # renames clusters; the vMF grouping below does not require it.
        per_pix = segsort_label_losses(
            embeddings[None], prototypes[None],
            semantic_labels[None], proto_sem_labels[None],
            cfg.sem_ann_concentration, valid_threshold=nc)[0]
        # guard: only average pixels whose class has at least one valid prototype
        cls = jnp.arange(nc, dtype=jnp.int32)
        class_present = jnp.any(
            (proto_sem_labels[None, :] == cls[:, None]) & valid_proto[None, :], axis=1)
        has_pos = class_present[jnp.clip(semantic_labels, 0, nc - 1)]
        w = (valid_pix & has_pos).astype(jnp.float32)
        sem_ann_loss = jnp.sum(per_pix * w) / jnp.maximum(jnp.sum(w), 1.0)
        sem_ann_loss = sem_ann_loss * cfg.sem_ann_loss_weight

        # --- sem_occ_loss (SetSegSortLoss over image-level tags) -------------
        per_pix_occ = segsort_tag_losses(
            embeddings, prototypes, semantic_tags, proto_sem_tags,
            cfg.sem_occ_concentration)
        any_proto_tag = jnp.any(proto_sem_tags > 0, axis=0)
        w_occ = jnp.any((semantic_tags > 0) & any_proto_tag[None, :],
                        axis=-1).astype(jnp.float32)
        sem_occ_loss = jnp.sum(per_pix_occ * w_occ) / jnp.maximum(jnp.sum(w_occ), 1.0)
        sem_occ_loss = sem_occ_loss * cfg.sem_occ_loss_weight

        # --- accuracy: top-5 prototype retrieval ------------------------------
        sim_pp = similarity(prototypes, prototypes)
        _, top5 = jax.lax.top_k(sim_pp, 5)
        top5_labels = proto_sem_labels[top5]
        # TODO(synk): exact metric lives in segsort_eval.top_k_ranking; here it is
        # the fraction of prototypes whose top-5 neighbours contain their own label.
        sem_ann_acc = jnp.mean(
            jnp.any(top5_labels == proto_sem_labels[:, None], axis=-1).astype(jnp.float32))

        # --- img_sim_loss (per-image SegSortLoss on instance labels) ----------
        # TODO(synk): assumes pixels are batch-contiguous with fixed pixels_per_image
        # (same assumption as the original slice-based implementation).
        B = cfg.batch_size
        ppi = cfg.pixels_per_image
        cpi = cfg.clusters_per_image
        emb_loc = datas['cluster_embedding_with_loc'].reshape(B, ppi, -1)
        inst_labels = datas['cluster_instance_label'].astype(jnp.int32).reshape(B, ppi)
        c_loc = cluster_indices.reshape(B, ppi) - jnp.arange(B, dtype=jnp.int32)[:, None] * cpi
        protos_b = calculate_prototypes(emb_loc, c_loc, cpi)               # (B, cpi, D)
        # segsort_common.prepare_prototype_labels: instance label per cluster
        rows = jnp.broadcast_to(jnp.arange(B, dtype=jnp.int32)[:, None], (B, ppi))
        p_labs = jnp.zeros((B, cpi), jnp.int32).at[rows, c_loc].set(inst_labels)
        per_pix_b = segsort_label_losses(
            emb_loc, protos_b, inst_labels, p_labs,
            cfg.img_sim_concentration, valid_threshold=2 ** 30)            # (B, ppi)
        img_sim_loss = jnp.mean(per_pix_b) * cfg.img_sim_loss_weight

        return sem_ann_loss, sem_occ_loss, img_sim_loss, sem_ann_acc

    # ----- forward --------------------------------------------------------
    def __call__(self, datas, targets=None, with_loss=True, with_prediction=False):
        targets = targets if targets is not None else {}
        outputs = {}
        if with_prediction:
            semantic_pred, semantic_topk = self.predictions(datas, targets)
            outputs.update({'semantic_prediction': semantic_pred,
                            'semantic_score': semantic_topk})
        if with_loss:
            sal, sol, isl, acc = self.losses(datas, targets)
            outputs.update({'sem_ann_loss': sal, 'sem_occ_loss': sol,
                            'img_sim_loss': isl, 'accuracy': acc})
        return outputs


# --------------------------------------------------------------------------
# Example run
# --------------------------------------------------------------------------
if __name__ == "__main__":
    B, N, D, C = 2, 256, 32, 16        # images, sampled pixels, embed dim, clusters
    NUM_CLASSES, P_T, M = 4, 24, 64    # classes, target prototypes, memory prototypes

    cfg = SimpleNamespace(
        num_classes=NUM_CLASSES, semantic_ignore_index=255, label_divisor=2048,
        sem_ann_concentration=16.0, sem_ann_loss_weight=1.0,
        sem_occ_concentration=8.0, sem_occ_loss_weight=0.5,
        img_sim_concentration=16.0, img_sim_loss_weight=0.1,
        batch_size=B, pixels_per_image=N // B,
        clusters_per_image=C // B, num_clusters=C)

    key = jax.random.PRNGKey(0)
    ks = jax.random.split(key, 8)

    emb = _l2_normalize(jax.random.normal(ks[0], (N, D), jnp.float32))
    emb_loc = _l2_normalize(jax.random.normal(ks[1], (N, D), jnp.float32))
    cluster_index = (jnp.arange(N, dtype=jnp.int32) * C) // N       # dense 0..C-1
    batch_index = (jnp.arange(N, dtype=jnp.int32) * B) // N
    cluster_sem = jax.random.randint(ks[2], (C,), 0, NUM_CLASSES, jnp.int32)
    cluster_sem = cluster_sem.at[3].set(255)                        # one ignored cluster
    semantic_label = cluster_sem[cluster_index]
    instance_label = cluster_index % (C // B)

    prototypes = _l2_normalize(jax.random.normal(ks[3], (P_T, D), jnp.float32))
    proto_sem = (jnp.arange(P_T, dtype=jnp.int32) % NUM_CLASSES).at[-4:].set(255)
    proto_batch = (jnp.arange(P_T, dtype=jnp.int32) * B) // P_T
    proto_tag = jax.nn.one_hot(jnp.where(proto_sem < NUM_CLASSES, proto_sem, 0),
                               NUM_CLASSES, dtype=jnp.int32).at[:, 1].set(1)
    semantic_tag = jnp.array([[0, 1, 1, 0], [0, 1, 0, 1]], jnp.int32)

    mem_protos = _l2_normalize(jax.random.normal(ks[4], (M, D), jnp.float32))
    mem_labels = jax.random.randint(ks[5], (M,), 0, NUM_CLASSES, jnp.int32)

    datas = {
        'cluster_embedding': emb,
        'cluster_embedding_with_loc': emb_loc,
        'cluster_index': cluster_index,
        'cluster_semantic_label': semantic_label,
        'cluster_instance_label': instance_label,
        'cluster_batch_index': batch_index,
    }
    targets = {
        'prototype': prototypes,
        'prototype_semantic_label': proto_sem,
        'prototype_batch_index': proto_batch,
        'prototype_semantic_tag': proto_tag,
        'semantic_tag': semantic_tag,
        'semantic_memory_prototype': mem_protos,
        'semantic_memory_prototype_label': mem_labels,
    }

    model = SegsortPallas(cfg)
    outputs = model(datas, targets, with_loss=True, with_prediction=True)
    outputs = jax.block_until_ready(outputs)

    assert outputs['semantic_prediction'].shape == (N,)
    assert outputs['semantic_score'].shape == (N, 20)
    for name in ('sem_ann_loss', 'sem_occ_loss', 'img_sim_loss', 'accuracy'):
        assert bool(jnp.all(jnp.isfinite(outputs[name])))
    print("KERNEL_OK")
</pallas_src>

<mosaic_0001>
module attributes {stable_mosaic.version = 11 : i64} {
  func.func @_prototype_kernel(%arg0: i32, %arg1: i32, %arg2: i32, %arg3: memref<1x256x32xbf16, #tpu.memory_space<vmem>>, %arg4: memref<1x1x256xi32, #tpu.memory_space<vmem>>, %arg5: memref<1x8x32xbf16, #tpu.memory_space<vmem>>, %arg6: memref<8x32xf32, #tpu.memory_space<vmem>>, %arg7: memref<8x256xi32, #tpu.memory_space<vmem>>) attributes {dimension_semantics = [#tpu.dimension_semantics<parallel>, #tpu.dimension_semantics<parallel>, #tpu.dimension_semantics<arbitrary>], iteration_bounds = array<i64: 1, 2, 1>, scalar_prefetch = 0 : i64, scratch_operands = 2 : i64, tpu.core_type = #tpu.core_type<tc>, window_params = [{transform_indices = @transform_0, window_bounds = array<i64: 1, 256, 32>}, {transform_indices = @transform_1, window_bounds = array<i64: 1, 1, 256>}, {transform_indices = @transform_2, window_bounds = array<i64: 1, 8, 32>}]} {
    %c0_i32 = arith.constant 0 : i32
    %0 = arith.cmpi eq, %arg2, %c0_i32 : i32
    %1 = arith.extui %0 : i1 to i32
    %c0_i32_0 = arith.constant 0 : i32
    %2 = arith.cmpi ne, %1, %c0_i32_0 : i32
    scf.if %2 {
      %cst_14 = arith.constant 0.000000e+00 : f32
      %20 = vector.broadcast %cst_14 : f32 to vector<8x32xf32>
      %c0_15 = arith.constant 0 : index
      %c0_16 = arith.constant 0 : index
      %21 = vector.load %arg6[%c0_15, %c0_16] : memref<8x32xf32, #tpu.memory_space<vmem>>, vector<8x32xf32>
      tpu.vector_store %arg6[%c0_15, %c0_16], %20 {strides = array<i32>} : memref<8x32xf32, #tpu.memory_space<vmem>>, vector<8x32xf32>,
      %c8_i32 = arith.constant 8 : i32
      %22 = arith.muli %arg1, %c8_i32 : i32
      %23 = tpu.iota {dimensions = array<i32: 0>} : vector<8x256xi32>
      %24 = vector.broadcast %22 : i32 to vector<8x256xi32>
      %25 = arith.addi %24, %23 : vector<8x256xi32>
      %c0_17 = arith.constant 0 : index
      %c0_18 = arith.constant 0 : index
      %26 = vector.load %arg7[%c0_17, %c0_18] : memref<8x256xi32, #tpu.memory_space<vmem>>, vector<8x256xi32>
      tpu.vector_store %arg7[%c0_17, %c0_18], %25 {strides = array<i32>} : memref<8x256xi32, #tpu.memory_space<vmem>>, vector<8x256xi32>,
    } else {
    }
    %c0 = arith.constant 0 : index
    %c0_1 = arith.constant 0 : index
    %3 = vector.load %arg7[%c0, %c0_1] : memref<8x256xi32, #tpu.memory_space<vmem>>, vector<8x256xi32>
    %c0_2 = arith.constant 0 : index
    %c0_3 = arith.constant 0 : index
    %c0_4 = arith.constant 0 : index
    %4 = vector.load %arg4[%c0_2, %c0_3, %c0_4] : memref<1x1x256xi32, #tpu.memory_space<vmem>>, vector<1x1x256xi32>
    %5 = vector.shape_cast %4 : vector<1x1x256xi32> to vector<1x256xi32>
    %6 = vector.broadcast %5 : vector<1x256xi32> to vector<8x256xi32>
    %7 = arith.cmpi eq, %3, %6 : vector<8x256xi32>
    %8 = arith.extui %7 : vector<8x256xi1> to vector<8x256xi32>
    %9 = arith.sitofp %8 : vector<8x256xi32> to vector<8x256xf32>
    %10 = arith.truncf %9 : vector<8x256xf32> to vector<8x256xbf16>
    %c0_5 = arith.constant 0 : index
    %c0_6 = arith.constant 0 : index
    %11 = vector.load %arg6[%c0_5, %c0_6] : memref<8x32xf32, #tpu.memory_space<vmem>>, vector<8x32xf32>
    %c0_7 = arith.constant 0 : index
    %c0_8 = arith.constant 0 : index
    %c0_9 = arith.constant 0 : index
    %12 = vector.load %arg3[%c0_7, %c0_8, %c0_9] : memref<1x256x32xbf16, #tpu.memory_space<vmem>>, vector<1x256x32xbf16>
    %13 = vector.shape_cast %12 : vector<1x256x32xbf16> to vector<256x32xbf16>
    %cst = arith.constant dense<0.000000e+00> : vector<8x32xf32>
    %14 = tpu.matmul %10, %13, %cst {dimension_numbers = #tpu.dot_dimension_numbers<[1], [0], [0], [1], [0, 0, 1, 1], [], []>} : vector<8x256xbf16>, vector<256x32xbf16>, vector<8x32xf32> -> vector<8x32xf32>
    %15 = arith.addf %11, %14 : vector<8x32xf32>
    %c0_10 = arith.constant 0 : index
    %c0_11 = arith.constant 0 : index
    %16 = vector.load %arg6[%c0_10, %c0_11] : memref<8x32xf32, #tpu.memory_space<vmem>>, vector<8x32xf32>
    tpu.vector_store %arg6[%c0_10, %c0_11], %15 {strides = array<i32>} : memref<8x32xf32, #tpu.memory_space<vmem>>, vector<8x32xf32>,
    %c0_i32_12 = arith.constant 0 : i32
    %17 = arith.cmpi eq, %arg2, %c0_i32_12 : i32
    %18 = arith.extui %17 : i1 to i32
    %c0_i32_13 = arith.constant 0 : i32
    %19 = arith.cmpi ne, %18, %c0_i32_13 : i32
    scf.if %19 {
      %c0_14 = arith.constant 0 : index
      %c0_15 = arith.constant 0 : index
      %20 = vector.load %arg6[%c0_14, %c0_15] : memref<8x32xf32, #tpu.memory_space<vmem>>, vector<8x32xf32>
      %21 = arith.mulf %20, %20 : vector<8x32xf32>
      %cst_16 = arith.constant dense<0.000000e+00> : vector<8xf32>
      %22 = vector.multi_reduction <add>, %21, %cst_16 [1] : vector<8x32xf32> to vector<8xf32>
      %23 = vector.shape_cast %22 : vector<8xf32> to vector<8x1xf32>
      %24 = math.sqrt %23 : vector<8x1xf32>
      %cst_17 = arith.constant 9.99999996E-13 : f32
      %25 = vector.broadcast %cst_17 : f32 to vector<8x1xf32>
      %26 = arith.maximumf %24, %25 : vector<8x1xf32>
      %27 = vector.broadcast %26 : vector<8x1xf32> to vector<8x32xf32>
      %28 = arith.divf %20, %27 : vector<8x32xf32>
      %29 = arith.truncf %28 : vector<8x32xf32> to vector<8x32xbf16>
      %c0_18 = arith.constant 0 : index
      %c0_19 = arith.constant 0 : index
      %c0_20 = arith.constant 0 : index
      %30 = vector.load %arg5[%c0_18, %c0_19, %c0_20] : memref<1x8x32xbf16, #tpu.memory_space<vmem>>, vector<1x8x32xbf16>
      %31 = vector.shape_cast %30 : vector<1x8x32xbf16> to vector<8x32xbf16>
      %32 = vector.shape_cast %29 : vector<8x32xbf16> to vector<1x8x32xbf16>
      tpu.vector_store %arg5[%c0_18, %c0_19, %c0_20], %32 {strides = array<i32>} : memref<1x8x32xbf16, #tpu.memory_space<vmem>>, vector<1x8x32xbf16>,
    } else {
    }
    return
  }
  func.func @transform_0(%arg0: i32, %arg1: i32, %arg2: i32) -> (i32, i32, i32) {
    %c0_i32 = arith.constant 0 : i32
    %c0_i32_0 = arith.constant 0 : i32
    return %arg0, %arg2, %c0_i32 : i32, i32, i32
  }
  func.func @transform_1(%arg0: i32, %arg1: i32, %arg2: i32) -> (i32, i32, i32) {
    %c0_i32 = arith.constant 0 : i32
    %c0_i32_0 = arith.constant 0 : i32
    return %arg0, %c0_i32, %arg2 : i32, i32, i32
  }
  func.func @transform_2(%arg0: i32, %arg1: i32, %arg2: i32) -> (i32, i32, i32) {
    %c0_i32 = arith.constant 0 : i32
    %c0_i32_0 = arith.constant 0 : i32
    return %arg0, %arg1, %c0_i32 : i32, i32, i32
  }
}

</mosaic_0001>

<bundles_post_ra>
// kernel: tpu_custom_call.1
= control target key start
LH: loop header
LB: loop body
LE: loop exit
PB: predicated region body
PF: predicated region fallthrough
CT: control target
= control target key end

     0   :  { %7 = vsyncpa [#allocation5], 0  ;;  %s952_s0 = inlined_call_operand.vmem [shape: bf16[1,256,32], index: 0, kind: input, shape index: {}]   ;;  %s953_s1 = inlined_call_operand.vmem [shape: s32[1,1,256], index: 1, kind: input, shape index: {}]   ;;  %s954_s2 = inlined_call_operand.hbm [shape: bf16[1,16,32], index: 2, kind: output, shape index: {}]  }
   0x1   :  { %9 = vsyncpa [#allocation5 + $0x1], 0  ;;  %s808_s9 = smov 0   ;;  %s810_s10 = smov 0  }
   0x2   :  { %s812_s11 = smov 0   ;;  %s814_s12 = smov 0  }
   0x3   :  { %s816_s13 = smov 0   ;;  %s818_s14 = smov 0  }
   0x4 LB: > { %s552_s15 = sadd.s32 4294967295, %s789_s14   ;;  %s553_s16 = sadd.s32 4294967294, %s789_s14   ;;  %s789_s14 = sphi %s818_s14, %s15_s14   ;;  %s785_s13 = sphi %s816_s13, %s961_s13   ;;  %s781_s12 = sphi %s814_s12, %s960_s12   ;;  %s777_s11 = sphi %s812_s11, %s959_s11   ;;  %s773_s10 = sphi %s810_s10, %s958_s10   ;;  %s769_s9 = sphi %s808_s9, %s957_s9  }
   0x5   : > { %s30_s17 = sadd.s32 1, %s785_s13  ;;  %s99_s18 = sadd.s32 1, %s777_s11 }
   0x6   : > { %p32_p0 = scmp.ge.s32.totalorder %s30_s17, 2  ;;  %p109_p1 = scmp.ne.s32.totalorder %s777_s11, %s773_s10 }
   0x7   : > { %p110_p2 = scmp.eq.s32.totalorder %s552_s15, 1  ;;  %p115_p3 = scmp.ne.s32.totalorder %s773_s10, %s769_s9 }
   0x8   : > { %s963_s17 = smov (%p32_p0, %s30_s17), 0  ;;  %p116_p5 = scmp.eq.s32.totalorder %s553_s16, 1 }
   0x9   : > { %p848_p4 = por %p110_p2, %p109_p1  ;;  %s95_s20 = ssub.s32 %s785_s13, %s963_s17 }
   0xa   : > { %p557_p6 = scmp.ge.s32.totalorder %s789_s14, 1  ;;  %p97_p7 = scmp.eq.s32.totalorder %s95_s20, 0 }
   0xb   : > { %p855_p8 = por %p116_p5, %p115_p3  ;;  %p159_p9 = scmp.lt.s32.totalorder %s789_s14, 3 }
   0xc   : > { %s861_s22 = scalar_select %p97_p7, %s777_s11, %s99_s18  }
   0xd   : > { %p160_p10 = pnand %p557_p6, %p159_p9 }
   0xe   : > { %s559_s25 = sshll.u32 (!%p160_p10), %s781_s12, 3  ;;  %s190_s20 = sand.u32 (!%p160_p10), 1, %s773_s10  }
   0xf   : > { %163 = sbr.rel (%p160_p10) target bundleno = 357 (0x165), region = 28  ;;  %s558_s23 = sshll.u32 (!%p160_p10), %s190_s20, 2 }
  0x10   : > { %s631_s24 = sshll.u32 (!%p160_p10), %s781_s12, 2  ;;  %s192_s28 = scalar_lea.vmem (!%p160_p10), [#allocation4], %s558_s23 }
  0x11   : > { %s448_s27 = scalar_lea.hbm (!%p160_p10), %s954_s2, %s631_s24  ;;  %s450_s29 = sshll.u32 (!%p160_p10), %s192_s28, 4  ;;  %s451_s29 = int_to_ptr.vmem [resolvable:$true] %s450_s29 }
  0x12   : > { %s452_s30 = sshll.u32 (!%p160_p10), %s448_s27, 4  ;;  %s436_s12 = scalar_lea.sflag (!%p160_p10), [#allocation5], %s190_s20  ;;  %s453_s30 = int_to_ptr.hbm [resolvable:$true] %s452_s30 }
  0x13   : > { %s725_s3 = sshra.s32 (!%p160_p10), %s453_s30, 4  ;;  %s731_s7 = scalar_lea.hbm (!%p160_p10), %s954_s2, 8  ;;  %s726_s3 = int_to_ptr.hbm [resolvable:$true] %s725_s3 }
  0x14   : > { %v641_v0 = vld [vmem:[%s952_s0 + $0x38] sm:$0xff]  ;;  %v640_v2 = vld [vmem:[%s952_s0 + $0x30] sm:$0xff]  ;;  %v639_v4 = vld [vmem:[%s952_s0 + $0x28] sm:$0xff]  ;;  %v219_v10 = vlaneseq  ;;  %v221_v14 = vstv %s559_s25  ;;  %v791_v23 = vmov 1.0|1.0   ;;  %vm216_vm4 = vcmask 261120   ;;  %p732_p0 = scmp.lt.s32.totalorder %s726_s3, %s954_s2 }
  0x15   : > { %v649_v1 = vld [vmem:[%s952_s0 + $0x78] sm:$0xff]  ;;  %367 = vmatpush.bf16.msra.mxu0 %v641_v0  ;;  %v648_v3 = vld [vmem:[%s952_s0 + $0x70] sm:$0xff]  ;;  %v647_v5 = vld [vmem:[%s952_s0 + $0x68] sm:$0xff]  ;;  %v792_v24 = vmov 0.0   ;;  %vm433_vm11 = vcmask 257024   ;;  %s727_s4 = scalar_lea.hbm %s726_s3, 4 }
  0x16   : > { %380 = vmatpush.bf16.msra.mxu1 %v649_v1  ;;  %v638_v6 = vld [vmem:[%s952_s0 + $0x20] sm:$0xff]  ;;  %v637_v8 = vld [vmem:[%s952_s0 + $0x18] sm:$0xff]  ;;  %v636_v11 = vld [vmem:[%s952_s0 + $0x10] sm:$0xff]  ;;  %v220_v13 = vshrl.u32 %v219_v10, 7  ;;  %217 = vst.msk [vmem:[#allocation2] sm:$0xff] %vm216_vm4, %v792_v24  ;;  %p728_p11 = scmp.ne.s32.totalorder %s726_s3, %s727_s4  ;;  %p733_p1 = scmp.lt.s32.totalorder %s731_s7, %s727_s4 }
  0x17   : > { %v646_v7 = vld [vmem:[%s952_s0 + $0x60] sm:$0xff]  ;;  %v645_v9 = vld [vmem:[%s952_s0 + $0x58] sm:$0xff]  ;;  %v644_v12 = vld [vmem:[%s952_s0 + $0x50] sm:$0xff] }
  0x18   : > { %v227_v15 = vld [vmem:[%s953_s1] sm:$0x3]  ;;  %v635_v16 = vld [vmem:[%s952_s0 + $0x8] sm:$0xff]  ;;  %v222_v18 = vadd.s32 %v221_v14, %v220_v13  ;;  %p729_p12 = pnand %p728_p11, %p848_p4  ;;  %p734_p2 = por %p733_p1, %p732_p0 }
  0x19   : > { %368 = vmatpush.bf16.msra.mxu0 %v640_v2  ;;  %v643_v17 = vld [vmem:[%s952_s0 + $0x48] sm:$0xff]  ;;  %v228_v19 = vperm.slane %v227_v15, 0  ;;  %v229_v20 = vperm.slane %v227_v15, 1  ;;  %v634_v21 = vld [vmem:[%s952_s0] sm:$0xff] }
  0x1a   : > { %381 = vmatpush.bf16.msra.mxu1 %v648_v3  ;;  %v642_v22 = vld [vmem:[%s952_s0 + $0x40] sm:$0xff]  ;;  %p730_p13 = pneg %p729_p12 }
  0x1b   : > { %vm230_vm0 = vcmp.eq.s32.totalorder %v222_v18, %v228_v19  ;;  %vm231_vm1 = vcmp.eq.s32.totalorder %v222_v18, %v229_v20 }
  0x1c   : > { %vm626_vm2 = vmpackc.low %vm230_vm0, %vm230_vm0  ;;  %p735_p3 = pnand %p734_p2, %p730_p13 }
  0x1d   : > { %369 = vmatpush.bf16.msra.mxu0 %v639_v4  ;;  %vm628_vm3 = vmpackc.low %vm231_vm1, %vm231_vm1  ;;  %v238_v27 = vld [vmem:[#allocation2] sm:$0xff] }
  0x1e   : > { %382 = vmatpush.bf16.msra.mxu1 %v647_v5 }
  0x21   : > { %370 = vmatpush.bf16.msra.mxu0 %v638_v6 }
  0x22   : > { %383 = vmatpush.bf16.msra.mxu1 %v646_v7 }
  0x25   : > { %371 = vmatpush.bf16.msra.mxu0 %v637_v8 }
  0x26   : > { %384 = vmatpush.bf16.msra.mxu1 %v645_v9 }
  0x29   : > { %372 = vmatpush.bf16.msra.mxu0 %v636_v11 }
  0x2a   : > { %385 = vmatpush.bf16.msra.mxu1 %v644_v12 }
  0x2d   : > { %373 = vmatpush.bf16.msra.mxu0 %v635_v16 }
  0x2e   : > { %386 = vmatpush.bf16.msra.mxu1 %v643_v17 }
  0x31   : > { %374 = vmatpush.bf16.msra.mxu0 %v634_v21 }
  0x32   : > { %387 = vmatpush.bf16.msra.mxu1 %v642_v22 }
  0x34   : > { %627 = vmatmul.msk.bf16.vlgmr.msra.gmra.mxu0 %vm626_vm2, %v791_v23 }
  0x35   : > { %629 = vmatmul.msk.bf16.vlgmr.msra.gmra.mxu1 %vm628_vm3, %v791_v23 }
  0xb1   : > { %v376_v25 = vpop.f32.mrf.mxu0 }
  0xb2   : > { %v389_v26 = vpop.f32.mrf.mxu1 }
  0xb3   : > { %v390_v28 = vadd.f32 %v389_v26, %v376_v25 }
  0xb5   : > { %v393_v29 = vadd.f32 %v390_v28, %v238_v27 }
  0xb7   : > { %395 = vst.msk [vmem:[#allocation2] sm:$0xff] %vm216_vm4, %v393_v29 }
  0xb9   : > { %v378_v30 = vpop.f32.mrf.mxu0 }
  0xba   : > { %v391_v31 = vpop.f32.mrf.mxu1 }
  0xbe   : > { %v399_v32 = vld [vmem:[#allocation2] sm:$0xff] }
  0xbf   : > { %v400_v33 = vmul.f32 %v399_v32, %v399_v32 }
  0xc1   : > { %v401_v34 = vsel %vm216_vm4, %v400_v33, 0.0 }
  0xc2   : > { %402 = vadd.xlane.f32.xlu0 %v401_v34 }
 0x135   : > { %v403_v35 = vpop.xlane.xlu0 %402 }
 0x136   : > { %707 = vrsqrt.f32 %v403_v35  ;;  %vm411_vm5 = vcmp.eq.f32.partialorder %v403_v35, inf  ;;  %v414_v43 = vand.u32 2147483648, %v403_v35  ;;  %vm413_vm6 = vcmp.eq.f32.partialorder %v403_v35, 0.0 }
 0x13c   : > { %v708_v36 = vpop.eup %707 }
 0x13d   : > { %v405_v37 = vmul.f32 %v708_v36, %v403_v35 }
 0x13f   : > { %v406_v38 = vmul.f32 %v708_v36, %v405_v37 }
 0x141   : > { %v407_v39 = vmul.f32 0.5, %v406_v38 }
 0x143   : > { %v408_v40 = vsub.f32 1.5, %v407_v39 }
 0x145   : > { %v409_v41 = vmul.f32 %v708_v36, %v408_v40 }
 0x147   : > { %v410_v42 = vmul.f32 %v409_v41, %v403_v35 }
 0x149   : > { %v412_v44 = vsel %vm411_vm5, %v403_v35, %v410_v42 }
 0x14a   : > { %v415_v45 = vsel %vm413_vm6, %v414_v43, %v412_v44 }
 0x14b   : > { %v416_v46 = vmax.f32 %v415_v45, 1e-12 }
 0x14d   : > { %709 = vrcp.f32 %v416_v46  ;;  %v428_v50 = vand.u32 2147483648, %v416_v46  ;;  %v426_v52 = vand.u32 2147483647, %v416_v46  ;;  %vm422_vm8 = vweird.f32 %v416_v46 }
 0x14f   : > { %v429_v54 = vor.u32 1.1754944e-38, %v428_v50  ;;  %vm427_vm10 = vcmp.eq.f32.partialorder %v426_v52, 8.507059e+37 }
 0x153   : > { %v710_v47 = vpop.eup %709 }
 0x154   : > { %v418_v48 = vmul.f32 %v710_v47, %v416_v46  ;;  %vm423_vm7 = vweird.f32 %v710_v47 }
 0x155   : > { %vm424_vm9 = vmor %vm422_vm8, %vm423_vm7 }
 0x156   : > { %v419_v49 = vsub.f32 1.0, %v418_v48 }
 0x158   : > { %v420_v51 = vmul.f32 %v710_v47, %v419_v49 }
 0x15a   : > { %v421_v53 = vadd.f32 %v710_v47, %v420_v51 }
 0x15c   : > { %v425_v55 = vsel %vm424_vm9, %v710_v47, %v421_v53 }
 0x15d   : > { %v430_v56 = vsel %vm427_vm10, %v429_v54, %v425_v55 }
 0x15e   : > { %v431_v57 = vmul.f32 %v430_v56, %v399_v32 }
 0x160   : > { %v432_v58 = vpack.c.bf16 %v431_v57, %v431_v57 }
 0x162   : > { %434 = vst.msk [vmem:[%s192_s28] sm:$0xf] %vm433_vm11, %v432_v58 }
 0x163   : > { %738 = shalt.err (!%p735_p3)
}
 0x164   : > { %650 = dma.vmem_to_hbm [thread:$0]  (%p848_p4), %s451_s29, 64, %s453_s30, %s436_s12  }
 0x165 PF: > { %p656_p5 = scmp.ge.s32.totalorder %s789_s14, 2  ;;  %s464_s16 = sand.u32 1, %s769_s9  }
 0x166   : > { %s465_s18 = scalar_lea.sflag [#allocation5], %s464_s16 }
 0x167   : > { %p653_p6 = pnand %p656_p5, %p855_p8 }
 0x169   : > { %p654_p7 = pneg %p653_p6 }
 0x16b   : > { %764 = dma.done.wait (%p654_p7), %s465_s18, 64  }
 0x16c   : > { %766 = vsyncadd (%p654_p7), %s465_s18, 4294967232  ;;  %s15_s14 = sadd.s32 1, %s789_s14   ;;  %s957_s9 = smov %s773_s10 }
 0x16d   : > { %p12_p9 = scmp.ge.s32.totalorder %s15_s14, 4   ;;  %s958_s10 = smov %s777_s11 }
 0x16e   : > { %s959_s11 = smov %s861_s22  ;;  %s960_s12 = smov %s785_s13 }
 0x16f   : > { %s961_s13 = smov %s963_s17  ;;  %14 = sbr.rel (!%p12_p9) target bundleno = 4 (0x4), region = 74 }
 0x174   :  { %471 = vsyncpa [#allocation5], 1 }
 0x175   :  { %473 = vsyncpa [#allocation5 + $0x1], 1 }

</bundles_post_ra>
